<compile_context>
chip_gen: v5e
topology: v5e:2x2
jax: 0.10.0
libtpu: 0.0.40
codegen_flags: <defaults>
</compile_context>

<pallas_src>
import functools

import jax
import jax.numpy as jnp
from jax import lax
from jax.experimental import pallas as pl
from jax.experimental.pallas import tpu as pltpu


def _round_up(x, m):
    return ((x + m - 1) // m) * m


def _mlp_kernel(x_ref,
                w1_ref, b1_ref,
                w2_ref, b2_ref,
                w3_ref, b3_ref,
                w4_ref, b4_ref,
                o_ref):
    """Fused 4-layer MLP forward, feature-major after layer 1.

    x_ref : (TILE_B, D_in)  -- natural row-major x tile
    wK_ref: (out_k, in_k)   -- native PyTorch nn.Linear weight layout
    bK_ref: (out_k, 1)      -- bias as a column (f32)
    o_ref : (D_out, TILE_B) -- y^T tile (lane-dense stores)
    """
    x = x_ref[...]                                            # (TILE_B, D_in)

    # Layer 1: contract x's feature dim (1) against W1's feature dim (1).
    # Result is (H, TILE_B): batch lands on the lane axis with no separate
    # transpose pass over x (the MXU consumes the transposed operand).
    h = lax.dot_general(w1_ref[...], x, (((1,), (1,)), ((), ())),
                        preferred_element_type=jnp.float32)
    h = jnp.maximum(h + b1_ref[...], 0.0)

    # Layer 2
    h = jnp.dot(w2_ref[...], h, preferred_element_type=jnp.float32)
    h = jnp.maximum(h + b2_ref[...], 0.0)

    # Layer 3
    h = jnp.dot(w3_ref[...], h, preferred_element_type=jnp.float32)
    h = jnp.maximum(h + b3_ref[...], 0.0)

    # Layer 4 (no activation).
    y = jnp.dot(w4_ref[...], h, preferred_element_type=jnp.float32) + b4_ref[...]

    o_ref[...] = y.astype(o_ref.dtype)


def view_time_predictor_forward(x, params, *, tile_b=8192, use_bf16=False):
    """Fused 4-layer MLP forward.

    x      : (B, input_dim) float
    params : dict with w1..w4 in PyTorch (out_dim, in_dim) layout, b1..b4 (out_dim,)
    returns: (B, output_dim) float32
    """
    x = jnp.asarray(x, jnp.float32)
    B, D_in = x.shape
    H = params["w1"].shape[0]
    D_out = params["w4"].shape[0]

    # Pad the batch only to a lane multiple (128); the grid handles a ragged
    # last tile, so we never pad up to a whole tile_b.
    B_pad = _round_up(B, 128)
    if B_pad != B:
        x = jnp.pad(x, ((0, B_pad - B), (0, 0)))

    # Batch tile: big enough (default 8192 lanes) that the per-step x DMA
    # (>= 512 KiB) dwarfs the ~0.35 us fixed grid-step overhead, but capped so
    # the grid keeps >= 2 "parallel" steps when the batch allows (v7x megacore).
    tile = min(_round_up(tile_b, 128), B_pad)
    if B_pad >= 256 and pl.cdiv(B_pad, tile) < 2:
        tile = _round_up(pl.cdiv(B_pad, 2), 128)
    grid = (pl.cdiv(B_pad, tile),)

    in_dtype = jnp.bfloat16 if use_bf16 else jnp.float32
    x_in = x.astype(in_dtype)
    w1 = params["w1"].astype(in_dtype)
    w2 = params["w2"].astype(in_dtype)
    w3 = params["w3"].astype(in_dtype)
    w4 = params["w4"].astype(in_dtype)
    b1 = params["b1"].reshape(-1, 1).astype(jnp.float32)
    b2 = params["b2"].reshape(-1, 1).astype(jnp.float32)
    b3 = params["b3"].reshape(-1, 1).astype(jnp.float32)
    b4 = params["b4"].reshape(-1, 1).astype(jnp.float32)

    # Advisory cost estimate for XLA's scheduler.
    flops = 2 * B_pad * (D_in * H + H * H + H * H + H * D_out)
    param_bytes = (w1.size + w2.size + w3.size + w4.size) * w1.dtype.itemsize \
        + (b1.size + b2.size + b3.size + b4.size) * 4
    bytes_accessed = B_pad * D_in * x_in.dtype.itemsize \
        + B_pad * D_out * 4 + param_bytes

    # VMEM budget: double-buffered x/out tiles + params + f32 intermediates,
    # clamped well inside v7x's 64 MiB physical VMEM.
    est_vmem = (2 * tile * D_in * x_in.dtype.itemsize
                + 2 * D_out * tile * 4
                + 2 * param_bytes
                + 4 * H * tile * 4)
    vmem_limit = int(min(32 * 2 ** 20, max(16 * 2 ** 20, 4 * est_vmem)))

    def const_spec(shape):
        # Same block every grid step -> fetched once by the pipeline.
        return pl.BlockSpec(shape, lambda i: (0,) * len(shape))

    call = pl.pallas_call(
        _mlp_kernel,
        out_shape=jax.ShapeDtypeStruct((D_out, B_pad), jnp.float32),
        grid_spec=pltpu.PrefetchScalarGridSpec(
            num_scalar_prefetch=0,
            grid=grid,
            in_specs=[
                pl.BlockSpec((tile, D_in), lambda i: (i, 0)),      # x tile
                const_spec((H, D_in)),   const_spec((H, 1)),       # layer 1
                const_spec((H, H)),      const_spec((H, 1)),       # layer 2
                const_spec((H, H)),      const_spec((H, 1)),       # layer 3
                const_spec((D_out, H)),  const_spec((D_out, 1)),   # layer 4
            ],
            out_specs=pl.BlockSpec((D_out, tile), lambda i: (0, i)),
        ),
        compiler_params=pltpu.CompilerParams(
            dimension_semantics=("parallel",),
            vmem_limit_bytes=vmem_limit,
        ),
        cost_estimate=pl.CostEstimate(
            flops=int(flops),
            transcendentals=0,
            bytes_accessed=int(bytes_accessed),
        ),
    )

    out_t = call(x_in, w1, b1, w2, b2, w3, b3, w4, b4)   # (D_out, B_pad)

    # (D_out, B_pad) -> (B, D_out); for D_out == 1 this is trivially cheap.
    return jnp.transpose(out_t[:, :B])


def init_params(key, input_dim, hidden_dim, output_dim):
    """Deterministic synthetic initialization (PyTorch-style uniform ranges)."""
    def linear_init(k, fan_in, fan_out):
        k_w, k_b = jax.random.split(k)
        bound = 1.0 / jnp.sqrt(fan_in)
        w = jax.random.uniform(k_w, (fan_out, fan_in), jnp.float32, -bound, bound)
        b = jax.random.uniform(k_b, (fan_out,), jnp.float32, -bound, bound)
        return w, b

    k1, k2, k3, k4 = jax.random.split(key, 4)
    w1, b1 = linear_init(k1, input_dim, hidden_dim)
    w2, b2 = linear_init(k2, hidden_dim, hidden_dim)
    w3, b3 = linear_init(k3, hidden_dim, hidden_dim)
    w4, b4 = linear_init(k4, hidden_dim, output_dim)
    return dict(w1=w1, b1=b1, w2=w2, b2=b2, w3=w3, b3=b3, w4=w4, b4=b4)


def _reference_forward(x, p):
    h = jnp.maximum(x @ p["w1"].T + p["b1"], 0.0)
    h = jnp.maximum(h @ p["w2"].T + p["b2"], 0.0)
    h = jnp.maximum(h @ p["w3"].T + p["b3"], 0.0)
    return h @ p["w4"].T + p["b4"]


if __name__ == "__main__":
    key = jax.random.PRNGKey(0)
    k_params, k_x = jax.random.split(key)

    batch = 8
    input_dim = 16
    hidden_dim = 32
    output_dim = 1

    params = init_params(k_params, input_dim, hidden_dim, output_dim)
    x = jax.random.normal(k_x, (batch, input_dim), dtype=jnp.float32)

    fwd = functools.partial(view_time_predictor_forward, tile_b=8192,
                            use_bf16=False)
    y = fwd(x, params)
    y = jax.block_until_ready(y)

    y_ref = _reference_forward(x, params)
    assert y.shape == (batch, output_dim), y.shape
    assert jnp.allclose(y, y_ref, atol=1e-4, rtol=1e-4), float(
        jnp.max(jnp.abs(y - y_ref)))

    print("KERNEL_OK")
</pallas_src>

<mosaic_0001>
module attributes {stable_mosaic.version = 11 : i64} {
  func.func @_mlp_kernel(%arg0: i32, %arg1: memref<128x16xf32, #tpu.memory_space<vmem>>, %arg2: memref<32x16xf32, #tpu.memory_space<vmem>>, %arg3: memref<32x1xf32, #tpu.memory_space<vmem>>, %arg4: memref<32x32xf32, #tpu.memory_space<vmem>>, %arg5: memref<32x1xf32, #tpu.memory_space<vmem>>, %arg6: memref<32x32xf32, #tpu.memory_space<vmem>>, %arg7: memref<32x1xf32, #tpu.memory_space<vmem>>, %arg8: memref<1x32xf32, #tpu.memory_space<vmem>>, %arg9: memref<1x1xf32, #tpu.memory_space<vmem>>, %arg10: memref<1x128xf32, #tpu.memory_space<vmem>>) attributes {dimension_semantics = [#tpu.dimension_semantics<parallel>], iteration_bounds = array<i64: 1>, scalar_prefetch = 0 : i64, scratch_operands = 0 : i64, tpu.core_type = #tpu.core_type<tc>, window_params = [{transform_indices = @transform_0, window_bounds = array<i64: 128, 16>}, {pipeline_mode = #tpu.pipeline_mode<synchronous>, transform_indices = @transform_1, window_bounds = array<i64: 32, 16>}, {pipeline_mode = #tpu.pipeline_mode<synchronous>, transform_indices = @transform_2, window_bounds = array<i64: 32, 1>}, {pipeline_mode = #tpu.pipeline_mode<synchronous>, transform_indices = @transform_3, window_bounds = array<i64: 32, 32>}, {pipeline_mode = #tpu.pipeline_mode<synchronous>, transform_indices = @transform_4, window_bounds = array<i64: 32, 1>}, {pipeline_mode = #tpu.pipeline_mode<synchronous>, transform_indices = @transform_5, window_bounds = array<i64: 32, 32>}, {pipeline_mode = #tpu.pipeline_mode<synchronous>, transform_indices = @transform_6, window_bounds = array<i64: 32, 1>}, {pipeline_mode = #tpu.pipeline_mode<synchronous>, transform_indices = @transform_7, window_bounds = array<i64: 1, 32>}, {pipeline_mode = #tpu.pipeline_mode<synchronous>, transform_indices = @transform_8, window_bounds = array<i64: 1, 1>}, {transform_indices = @transform_9, window_bounds = array<i64: 1, 128>}]} {
    %c0 = arith.constant 0 : index
    %c0_0 = arith.constant 0 : index
    %0 = vector.load %arg1[%c0, %c0_0] : memref<128x16xf32, #tpu.memory_space<vmem>>, vector<128x16xf32>
    %c0_1 = arith.constant 0 : index
    %c0_2 = arith.constant 0 : index
    %1 = vector.load %arg2[%c0_1, %c0_2] : memref<32x16xf32, #tpu.memory_space<vmem>>, vector<32x16xf32>
    %cst = arith.constant dense<0.000000e+00> : vector<32x128xf32>
    %2 = tpu.matmul %1, %0, %cst {dimension_numbers = #tpu.dot_dimension_numbers<[1], [1], [0], [0], [0, 0, 1, 0], [], []>} : vector<32x16xf32>, vector<128x16xf32>, vector<32x128xf32> -> vector<32x128xf32>
    %c0_3 = arith.constant 0 : index
    %c0_4 = arith.constant 0 : index
    %3 = vector.load %arg3[%c0_3, %c0_4] : memref<32x1xf32, #tpu.memory_space<vmem>>, vector<32x1xf32>
    %4 = vector.broadcast %3 : vector<32x1xf32> to vector<32x128xf32>
    %5 = arith.addf %2, %4 : vector<32x128xf32>
    %cst_5 = arith.constant 0.000000e+00 : f32
    %6 = vector.broadcast %cst_5 : f32 to vector<32x128xf32>
    %7 = arith.maximumf %5, %6 : vector<32x128xf32>
    %c0_6 = arith.constant 0 : index
    %c0_7 = arith.constant 0 : index
    %8 = vector.load %arg4[%c0_6, %c0_7] : memref<32x32xf32, #tpu.memory_space<vmem>>, vector<32x32xf32>
    %cst_8 = arith.constant dense<0.000000e+00> : vector<32x128xf32>
    %9 = tpu.matmul %8, %7, %cst_8 {dimension_numbers = #tpu.dot_dimension_numbers<[1], [0], [0], [1], [0, 0, 1, 1], [], []>} : vector<32x32xf32>, vector<32x128xf32>, vector<32x128xf32> -> vector<32x128xf32>
    %c0_9 = arith.constant 0 : index
    %c0_10 = arith.constant 0 : index
    %10 = vector.load %arg5[%c0_9, %c0_10] : memref<32x1xf32, #tpu.memory_space<vmem>>, vector<32x1xf32>
    %11 = vector.broadcast %10 : vector<32x1xf32> to vector<32x128xf32>
    %12 = arith.addf %9, %11 : vector<32x128xf32>
    %cst_11 = arith.constant 0.000000e+00 : f32
    %13 = vector.broadcast %cst_11 : f32 to vector<32x128xf32>
    %14 = arith.maximumf %12, %13 : vector<32x128xf32>
    %c0_12 = arith.constant 0 : index
    %c0_13 = arith.constant 0 : index
    %15 = vector.load %arg6[%c0_12, %c0_13] : memref<32x32xf32, #tpu.memory_space<vmem>>, vector<32x32xf32>
    %cst_14 = arith.constant dense<0.000000e+00> : vector<32x128xf32>
    %16 = tpu.matmul %15, %14, %cst_14 {dimension_numbers = #tpu.dot_dimension_numbers<[1], [0], [0], [1], [0, 0, 1, 1], [], []>} : vector<32x32xf32>, vector<32x128xf32>, vector<32x128xf32> -> vector<32x128xf32>
    %c0_15 = arith.constant 0 : index
    %c0_16 = arith.constant 0 : index
    %17 = vector.load %arg7[%c0_15, %c0_16] : memref<32x1xf32, #tpu.memory_space<vmem>>, vector<32x1xf32>
    %18 = vector.broadcast %17 : vector<32x1xf32> to vector<32x128xf32>
    %19 = arith.addf %16, %18 : vector<32x128xf32>
    %cst_17 = arith.constant 0.000000e+00 : f32
    %20 = vector.broadcast %cst_17 : f32 to vector<32x128xf32>
    %21 = arith.maximumf %19, %20 : vector<32x128xf32>
    %c0_18 = arith.constant 0 : index
    %c0_19 = arith.constant 0 : index
    %22 = vector.load %arg8[%c0_18, %c0_19] : memref<1x32xf32, #tpu.memory_space<vmem>>, vector<1x32xf32>
    %cst_20 = arith.constant dense<0.000000e+00> : vector<1x128xf32>
    %23 = tpu.matmul %22, %21, %cst_20 {dimension_numbers = #tpu.dot_dimension_numbers<[1], [0], [0], [1], [0, 0, 1, 1], [], []>} : vector<1x32xf32>, vector<32x128xf32>, vector<1x128xf32> -> vector<1x128xf32>
    %c0_21 = arith.constant 0 : index
    %c0_22 = arith.constant 0 : index
    %24 = vector.load %arg9[%c0_21, %c0_22] : memref<1x1xf32, #tpu.memory_space<vmem>>, vector<1x1xf32>
    %25 = vector.broadcast %24 : vector<1x1xf32> to vector<1x128xf32>
    %26 = arith.addf %23, %25 : vector<1x128xf32>
    %c0_23 = arith.constant 0 : index
    %c0_24 = arith.constant 0 : index
    %27 = vector.load %arg10[%c0_23, %c0_24] : memref<1x128xf32, #tpu.memory_space<vmem>>, vector<1x128xf32>
    tpu.vector_store %arg10[%c0_23, %c0_24], %26 {strides = array<i32>} : memref<1x128xf32, #tpu.memory_space<vmem>>, vector<1x128xf32>,
    return
  }
  func.func @transform_0(%arg0: i32) -> (i32, i32) {
    %c0_i32 = arith.constant 0 : i32
    %c0_i32_0 = arith.constant 0 : i32
    return %arg0, %c0_i32 : i32, i32
  }
  func.func @transform_1(%arg0: i32) -> (i32, i32) {
    %c0_i32 = arith.constant 0 : i32
    %c0_i32_0 = arith.constant 0 : i32
    %c0_i32_1 = arith.constant 0 : i32
    return %c0_i32, %c0_i32_0 : i32, i32
  }
  func.func @transform_2(%arg0: i32) -> (i32, i32) {
    %c0_i32 = arith.constant 0 : i32
    %c0_i32_0 = arith.constant 0 : i32
    %c0_i32_1 = arith.constant 0 : i32
    return %c0_i32, %c0_i32_0 : i32, i32
  }
  func.func @transform_3(%arg0: i32) -> (i32, i32) {
    %c0_i32 = arith.constant 0 : i32
    %c0_i32_0 = arith.constant 0 : i32
    %c0_i32_1 = arith.constant 0 : i32
    return %c0_i32, %c0_i32_0 : i32, i32
  }
  func.func @transform_4(%arg0: i32) -> (i32, i32) {
    %c0_i32 = arith.constant 0 : i32
    %c0_i32_0 = arith.constant 0 : i32
    %c0_i32_1 = arith.constant 0 : i32
    return %c0_i32, %c0_i32_0 : i32, i32
  }
  func.func @transform_5(%arg0: i32) -> (i32, i32) {
    %c0_i32 = arith.constant 0 : i32
    %c0_i32_0 = arith.constant 0 : i32
    %c0_i32_1 = arith.constant 0 : i32
    return %c0_i32, %c0_i32_0 : i32, i32
  }
  func.func @transform_6(%arg0: i32) -> (i32, i32) {
    %c0_i32 = arith.constant 0 : i32
    %c0_i32_0 = arith.constant 0 : i32
    %c0_i32_1 = arith.constant 0 : i32
    return %c0_i32, %c0_i32_0 : i32, i32
  }
  func.func @transform_7(%arg0: i32) -> (i32, i32) {
    %c0_i32 = arith.constant 0 : i32
    %c0_i32_0 = arith.constant 0 : i32
    %c0_i32_1 = arith.constant 0 : i32
    return %c0_i32, %c0_i32_0 : i32, i32
  }
  func.func @transform_8(%arg0: i32) -> (i32, i32) {
    %c0_i32 = arith.constant 0 : i32
    %c0_i32_0 = arith.constant 0 : i32
    %c0_i32_1 = arith.constant 0 : i32
    return %c0_i32, %c0_i32_0 : i32, i32
  }
  func.func @transform_9(%arg0: i32) -> (i32, i32) {
    %c0_i32 = arith.constant 0 : i32
    %c0_i32_0 = arith.constant 0 : i32
    return %c0_i32, %arg0 : i32, i32
  }
}

</mosaic_0001>

<bundles_post_ra>
// kernel: tpu_custom_call.1
= control target key start
LH: loop header
LB: loop body
LE: loop exit
PB: predicated region body
PF: predicated region fallthrough
CT: control target
= control target key end

     0   :  { %s638_s0 = inlined_call_operand.vmem [shape: f32[128,16], index: 0, kind: input, shape index: {}]   ;;  %s639_s1 = inlined_call_operand.vmem [shape: f32[32,16], index: 1, kind: input, shape index: {}]   ;;  %s640_s2 = inlined_call_operand.vmem [shape: f32[32,1], index: 2, kind: input, shape index: {}]   ;;  %s641_s3 = inlined_call_operand.vmem [shape: f32[32,32], index: 3, kind: input, shape index: {}]   ;;  %s642_s4 = inlined_call_operand.vmem [shape: f32[32,1], index: 4, kind: input, shape index: {}]   ;;  %s643_s5 = inlined_call_operand.vmem [shape: f32[32,32], index: 5, kind: input, shape index: {}]   ;;  %s644_s6 = inlined_call_operand.vmem [shape: f32[32,1], index: 6, kind: input, shape index: {}]   ;;  %s645_s7 = inlined_call_operand.vmem [shape: f32[1,32], index: 7, kind: input, shape index: {}]   ;;  %s646_s8 = inlined_call_operand.<no memory space> [shape: f32[1,1], index: 8, kind: input, shape index: {}]   ;;  %s647_s9 = inlined_call_operand.hbm [shape: f32[1,128], index: 9, kind: output, shape index: {}]  }
   0x1   :  { %v14_v0 = vstv %s646_s8 }
   0x2   :  { %15 = vst [vmem:[#allocation2] sm:$0x1] %v14_v0 }
   0x3   :  { %v50_v1 = vld [vmem:[%s638_s0 + $0x78] sm:$0xff]  ;;  %vm79_vm0 = vcmask 130048   ;;  %v49_v2 = vld [vmem:[%s638_s0 + $0x70] sm:$0xff] }
   0x4   :  { %368 = vmatpush.xpose.msk.msra.mxu0 %vm79_vm0, %v50_v1 }
   0x5   :  { %16 = vsyncpa [#allocation4], 0  ;;  %v48_v3 = vld [vmem:[%s638_s0 + $0x68] sm:$0xff]  ;;  %v47_v4 = vld [vmem:[%s638_s0 + $0x60] sm:$0xff]  ;;  %v428_v10 = vmov 0   ;;  %vm201_vm1 = vcmask 261120  }
   0x6   :  { %v46_v5 = vld [vmem:[%s638_s0 + $0x58] sm:$0xff]  ;;  %v45_v6 = vld [vmem:[%s638_s0 + $0x50] sm:$0xff]  ;;  %v44_v7 = vld [vmem:[%s638_s0 + $0x48] sm:$0xff]  ;;  %399 = vset.pattern.permute.xlu0 %v428_v10  ;;  %400 = vset.pattern.permute.xlu1 %v428_v10  ;;  %s429_s17 = smov [#allocation3]   ;;  %s359_s21 = sshll.u32 %s647_s9, 4  ;;  %s360_s21 = int_to_ptr.hbm [resolvable:$true] %s359_s21 }
   0x7   :  { %v58_v8 = vld [vmem:[%s640_s2 + $0x18] sm:$0xff]  ;;  %v43_v9 = vld [vmem:[%s638_s0 + $0x40] sm:$0xff]  ;;  %401 = vset.pattern.permute.xlu2 %v428_v10  ;;  %v56_v12 = vld [vmem:[%s640_s2 + $0x8] sm:$0xff]  ;;  %s357_s18 = sshll.u32 %s429_s17, 4  ;;  %s358_s18 = int_to_ptr.vmem [resolvable:$true] %s357_s18 }
   0x8   :  { %369 = vmatpush.xpose.msk.msra.mxu0 %vm79_vm0, %v49_v2  ;;  %76 = vperm.xlu0 %399, %v58_v8   ;;  %v42_v11 = vld [vmem:[%s638_s0 + $0x38] sm:$0xff]  ;;  %v57_v13 = vld [vmem:[%s640_s2 + $0x10] sm:$0xff]  ;;  %v40_v15 = vld [vmem:[%s638_s0 + $0x28] sm:$0xff] }
   0x9   :  { %66 = vperm.xlu1 %400, %v56_v12   ;;  %v41_v14 = vld [vmem:[%s638_s0 + $0x30] sm:$0xff]  ;;  %v55_v16 = vld [vmem:[%s640_s2] sm:$0xff]  ;;  %v178_v17 = vld [vmem:[%s642_s4 + $0x8] sm:$0xff] }
   0xa   :  { %v39_v18 = vld [vmem:[%s638_s0 + $0x20] sm:$0xff]  ;;  %v38_v19 = vld [vmem:[%s638_s0 + $0x18] sm:$0xff]  ;;  %v253_v20 = vld [vmem:[%s644_s6 + $0x10] sm:$0xff] }
   0xb   :  { %v37_v21 = vld [vmem:[%s638_s0 + $0x10] sm:$0xff]  ;;  %v36_v22 = vld [vmem:[%s638_s0 + $0x8] sm:$0xff]  ;;  %v177_v23 = vld [vmem:[%s642_s4] sm:$0xff] }
   0xc   :  { %370 = vmatpush.xpose.msk.msra.mxu0 %vm79_vm0, %v48_v3  ;;  %v321_v24 = vld [vmem:[#allocation2] sm:$0x1]  ;;  %v252_v27 = vld [vmem:[%s644_s6 + $0x8] sm:$0xff]  ;;  %v53_v29 = vld [vmem:[%s639_s1 + $0x10] sm:$0xff] }
   0xd   :  { %v35_v25 = vld [vmem:[%s638_s0] sm:$0xff]  ;;  %v52_v28 = vld [vmem:[%s639_s1 + $0x8] sm:$0xff]  ;;  %v54_v30 = vld [vmem:[%s639_s1 + $0x18] sm:$0xff] }
   0xe   :  { %v51_v26 = vld [vmem:[%s639_s1] sm:$0xff]  ;;  %v180_v43 = vld [vmem:[%s642_s4 + $0x18] sm:$0xff]  ;;  %v179_v49 = vld [vmem:[%s642_s4 + $0x10] sm:$0xff] }
   0xf   :  { %198 = vperm.xlu2 %401, %v180_v43   ;;  %v173_v48 = vld [vmem:[%s641_s3] sm:$0xff]  ;;  %v174_v50 = vld [vmem:[%s641_s3 + $0x8] sm:$0xff]  ;;  %v254_v51 = vld [vmem:[%s644_s6 + $0x18] sm:$0xff] }
  0x10   :  { %371 = vmatpush.xpose.msk.msra.mxu0 %vm79_vm0, %v47_v4  ;;  %71 = vperm.xlu0 %399, %v57_v13   ;;  %v175_v52 = vld [vmem:[%s641_s3 + $0x10] sm:$0xff]  ;;  %v251_v53 = vld [vmem:[%s644_s6] sm:$0xff]  ;;  %v176_v54 = vld [vmem:[%s641_s3 + $0x18] sm:$0xff] }
  0x11   :  { %61 = vperm.xlu1 %400, %v55_v16   ;;  %v248_v8 = vld [vmem:[%s643_s5 + $0x8] sm:$0xff]  ;;  %v250_v10 = vld [vmem:[%s643_s5 + $0x18] sm:$0xff] }
  0x14   :  { %372 = vmatpush.xpose.msk.msra.mxu0 %vm79_vm0, %v46_v5 }
  0x17   :  { %193 = vperm.xlu2 %401, %v179_v49  }
  0x18   :  { %373 = vmatpush.xpose.msk.msra.mxu0 %vm79_vm0, %v45_v6  ;;  %188 = vperm.xlu0 %399, %v178_v17  }
  0x19   :  { %183 = vperm.xlu1 %400, %v177_v23  }
  0x1c   :  { %374 = vmatpush.xpose.msk.msra.mxu0 %vm79_vm0, %v44_v7  ;;  %v247_v7 = vld [vmem:[%s643_s5] sm:$0xff] }
  0x1f   :  { %272 = vperm.xlu2 %401, %v254_v51  }
  0x20   :  { %375 = vmatpush.xpose.msk.msra.mxu0 %vm79_vm0, %v43_v9  ;;  %267 = vperm.xlu0 %399, %v253_v20   ;;  %v249_v9 = vld [vmem:[%s643_s5 + $0x10] sm:$0xff] }
  0x21   :  { %262 = vperm.xlu1 %400, %v252_v27   ;;  %v320_v27 = vld [vmem:[%s645_s7] sm:$0x1] }
  0x24   :  { %376 = vmatpush.xpose.msk.msra.mxu0 %vm79_vm0, %v42_v11 }
  0x27   :  { %257 = vperm.xlu2 %401, %v251_v53  }
  0x28   :  { %377 = vmatpush.xpose.msk.msra.mxu0 %vm79_vm0, %v41_v14  ;;  %324 = vperm.xlu0 %399, %v321_v24  }
  0x2c   :  { %378 = vmatpush.xpose.msk.msra.mxu0 %vm79_vm0, %v40_v15 }
  0x30   :  { %379 = vmatpush.xpose.msk.msra.mxu0 %vm79_vm0, %v39_v18 }
  0x34   :  { %380 = vmatpush.xpose.msk.msra.mxu0 %vm79_vm0, %v38_v19 }
  0x38   :  { %381 = vmatpush.xpose.msk.msra.mxu0 %vm79_vm0, %v37_v21 }
  0x3c   :  { %382 = vmatpush.xpose.msk.msra.mxu0 %vm79_vm0, %v36_v22 }
  0x40   :  { %383 = vmatpush.xpose.msk.msra.mxu0 %vm79_vm0, %v35_v25 }
  0x43   :  { %384 = vmatmul.msk.f32.vlgmr.msra.gmra.mxu0 %vm79_vm0, %v51_v26 }
  0x4b   :  { %385 = vmatmul.msk.f32.gmra.mxu0 %vm79_vm0, %v52_v28 }
  0x53   :  { %386 = vmatmul.msk.f32.gmra.mxu0 %vm79_vm0, %v53_v29 }
  0x5b   :  { %387 = vmatmul.msk.f32.gmra.mxu0 %vm79_vm0, %v54_v30 }
  0x69   :  { %v199_v57 = vpop.permute.xlu2 %198 }
  0x71   :  { %v194_v59 = vpop.permute.xlu2 %193 }
  0x79   :  { %v273_v14 = vpop.permute.xlu2 %272 }
  0x7a   :  { %v77_v33 = vpop.permute.xlu0 %76 }
  0x7b   :  { %v67_v34 = vpop.permute.xlu1 %66 }
  0x81   :  { %v258_v22 = vpop.permute.xlu2 %257 }
  0x82   :  { %v72_v36 = vpop.permute.xlu0 %71 }
  0x83   :  { %v62_v40 = vpop.permute.xlu1 %61 }
  0x8a   :  { %v189_v63 = vpop.permute.xlu0 %188 }
  0x8b   :  { %v184_v2 = vpop.permute.xlu1 %183 }
  0x92   :  { %v268_v15 = vpop.permute.xlu0 %267 }
  0x93   :  { %v263_v19 = vpop.permute.xlu1 %262 }
  0x9a   :  { %v325_v28 = vpop.permute.xlu0 %324 }
  0x9b   :  { %v327_v29 = vperm.slane %v325_v28, 0 }
  0xc0   :  { %v157_v31 = vpop.f32.mrf.mxu0 }
  0xc1   :  { %v158_v44 = vadd.f32 %v157_v31, %v62_v40 }
  0xc3   :  { %v169_v47 = vmax.f32 %v158_v44, 0.0 }
  0xc8   :  { %v160_v32 = vpop.f32.mrf.mxu0 }
  0xc9   :  { %v161_v41 = vadd.f32 %v160_v32, %v67_v34 }
  0xcb   :  { %v170_v46 = vmax.f32 %v161_v41, 0.0 }
  0xd0   :  { %v163_v35 = vpop.f32.mrf.mxu0 }
  0xd1   :  { %v164_v38 = vadd.f32 %v163_v35, %v72_v36 }
  0xd3   :  { %v171_v45 = vmax.f32 %v164_v38, 0.0 }
  0xd8   :  { %v166_v37 = vpop.f32.mrf.mxu0 }
  0xd9   :  { %v167_v39 = vadd.f32 %v166_v37, %v77_v33 }
  0xdb   :  { %v172_v42 = vmax.f32 %v167_v39, 0.0 }
  0xdd   :  { %226 = vmatpush.msra.mxu1 %v172_v42 }
  0xdf   :  { %227 = vmatpush.msra.mxu1 %v171_v45 }
  0xe1   :  { %228 = vmatpush.msra.mxu1 %v170_v46 }
  0xe3   :  { %229 = vmatpush.msra.mxu1 %v169_v47 }
  0xe4   :  { %388 = vmatmul.msk.f32.vlgmr.msra.gmra.mxu1 %vm201_vm1, %v173_v48 }
  0xec   :  { %389 = vmatmul.msk.f32.gmra.mxu1 %vm201_vm1, %v174_v50 }
  0xf4   :  { %390 = vmatmul.msk.f32.gmra.mxu1 %vm201_vm1, %v175_v52 }
  0xfc   :  { %391 = vmatmul.msk.f32.gmra.mxu1 %vm201_vm1, %v176_v54 }
 0x161   :  { %v231_v55 = vpop.f32.mrf.mxu1 }
 0x162   :  { %v232_v3 = vadd.f32 %v231_v55, %v184_v2 }
 0x164   :  { %v243_v6 = vmax.f32 %v232_v3, 0.0 }
 0x169   :  { %v234_v56 = vpop.f32.mrf.mxu1 }
 0x16a   :  { %v235_v0 = vadd.f32 %v234_v56, %v189_v63 }
 0x16c   :  { %v244_v5 = vmax.f32 %v235_v0, 0.0 }
 0x171   :  { %v237_v58 = vpop.f32.mrf.mxu1 }
 0x172   :  { %v238_v61 = vadd.f32 %v237_v58, %v194_v59 }
 0x174   :  { %v245_v4 = vmax.f32 %v238_v61, 0.0 }
 0x179   :  { %v240_v60 = vpop.f32.mrf.mxu1 }
 0x17a   :  { %v241_v62 = vadd.f32 %v240_v60, %v199_v57 }
 0x17c   :  { %v246_v1 = vmax.f32 %v241_v62, 0.0 }
 0x17e   :  { %299 = vmatpush.msra.mxu2 %v246_v1 }
 0x180   :  { %300 = vmatpush.msra.mxu2 %v245_v4 }
 0x182   :  { %301 = vmatpush.msra.mxu2 %v244_v5 }
 0x184   :  { %302 = vmatpush.msra.mxu2 %v243_v6 }
 0x185   :  { %392 = vmatmul.msk.f32.vlgmr.msra.gmra.mxu2 %vm201_vm1, %v247_v7 }
 0x18d   :  { %393 = vmatmul.msk.f32.gmra.mxu2 %vm201_vm1, %v248_v8 }
 0x195   :  { %394 = vmatmul.msk.f32.gmra.mxu2 %vm201_vm1, %v249_v9 }
 0x19d   :  { %395 = vmatmul.msk.f32.gmra.mxu2 %vm201_vm1, %v250_v10 }
 0x208   :  { %v304_v11 = vpop.f32.mrf.mxu2 }
 0x209   :  { %v305_v23 = vadd.f32 %v304_v11, %v258_v22 }
 0x20b   :  { %v316_v26 = vmax.f32 %v305_v23, 0.0 }
 0x210   :  { %v307_v12 = vpop.f32.mrf.mxu2 }
 0x211   :  { %v308_v20 = vadd.f32 %v307_v12, %v263_v19 }
 0x213   :  { %v317_v25 = vmax.f32 %v308_v20, 0.0 }
 0x218   :  { %v310_v13 = vpop.f32.mrf.mxu2 }
 0x219   :  { %v311_v17 = vadd.f32 %v310_v13, %v268_v15 }
 0x21b   :  { %v318_v24 = vmax.f32 %v311_v17, 0.0 }
 0x220   :  { %v313_v16 = vpop.f32.mrf.mxu2 }
 0x221   :  { %v314_v18 = vadd.f32 %v313_v16, %v273_v14 }
 0x223   :  { %v319_v21 = vmax.f32 %v314_v18, 0.0 }
 0x225   :  { %343 = vmatpush.msra.mxu3 %v319_v21 }
 0x227   :  { %344 = vmatpush.msra.mxu3 %v318_v24 }
 0x229   :  { %345 = vmatpush.msra.mxu3 %v317_v25 }
 0x22b   :  { %346 = vmatpush.msra.mxu3 %v316_v26 }
 0x22c   :  { %396 = vmatmul.msk.f32.vlgmr.msra.gmra.mxu3 %vm201_vm1, %v320_v27 }
 0x2af   :  { %v348_v30 = vpop.f32.mrf.mxu3 }
 0x2b0   :  { %v349_v31 = vadd.f32 %v348_v30, %v327_v29 }
 0x2b2   :  { %351 = vst [vmem:[#allocation3] sm:$0x1] %v349_v31 }
 0x2b3   :  { %362 = dma.vmem_to_hbm [thread:$0]  %s358_s18, 16, %s360_s21, [#allocation4]  }
 0x2b4   :  { %426 = dma.done.wait [#allocation4], 16  }
 0x2b5   :  { %427 = vsyncadd [#allocation4], 4294967280 }
 0x2b6   :  { %367 = vsyncpa [#allocation4], 1 }

</bundles_post_ra>
